<compile_context>
chip_gen: v6e
topology: v6e:2x2x1
jax: 0.10.0
libtpu: 0.0.40
codegen_flags: <defaults>
</compile_context>

<pallas_src>
import functools

import jax
import jax.numpy as jnp
from jax.experimental import pallas as pl
from jax.experimental.pallas import tpu as pltpu


def _ce_block_kernel_onehot(logits_ref, labels_ref, out_ref, *, n_rows, block_rows):
    """Accumulates this block's summed NLL (strict one-hot labels) into (1,1)."""
    pid = pl.program_id(0)

    @pl.when(pid == 0)
    def _init():
        out_ref[...] = jnp.zeros_like(out_ref)

    x = logits_ref[...].astype(jnp.float32)              # [TN, C]
    y = labels_ref[...].astype(jnp.float32)              # [TN, C] one-hot

    # Fused, numerically stable NLL: (m + log sum exp(x - m)) - x[label].
    m = jnp.max(x, axis=-1, keepdims=True)                # [TN, 1]
    lse = jnp.log(jnp.sum(jnp.exp(x - m), axis=-1, keepdims=True))
    x_lab = jnp.sum(y * x, axis=-1, keepdims=True)        # x at the label
    per_row = (m + lse) - x_lab                           # [TN, 1]

    # Mask padded rows BEFORE the reduction (garbage rows may carry NaN/Inf).
    row = pid * block_rows + jax.lax.broadcasted_iota(
        jnp.int32, (block_rows, 1), 0)
    per_row = jnp.where(row < n_rows, per_row, 0.0)

    out_ref[...] += jnp.sum(per_row, axis=0, keepdims=True)


def _ce_block_kernel_int(logits_ref, labels_ref, out_ref, *, n_rows, block_rows):
    """Accumulates this block's summed NLL (int32 class ids) into (1,1)."""
    pid = pl.program_id(0)

    @pl.when(pid == 0)
    def _init():
        out_ref[...] = jnp.zeros_like(out_ref)

    x = logits_ref[...].astype(jnp.float32)               # [TN, C]
    lab = labels_ref[...]                                  # [TN, 1] int32
    c = x.shape[-1]

    m = jnp.max(x, axis=-1, keepdims=True)
    lse = jnp.log(jnp.sum(jnp.exp(x - m), axis=-1, keepdims=True))

    cls = jax.lax.broadcasted_iota(jnp.int32, (block_rows, c), 1)
    x_lab = jnp.sum(jnp.where(cls == lab, x, 0.0), axis=-1, keepdims=True)
    per_row = (m + lse) - x_lab                            # [TN, 1]

    row = pid * block_rows + jax.lax.broadcasted_iota(
        jnp.int32, (block_rows, 1), 0)
    per_row = jnp.where(row < n_rows, per_row, 0.0)

    out_ref[...] += jnp.sum(per_row, axis=0, keepdims=True)


def _vmem_budget_and_limit():
    """Generation-aware (budget for streamed blocks, vmem_limit_bytes)."""
    cap = 64 * 1024 * 1024
    try:
        cap = int(getattr(pltpu.get_tpu_info(), "vmem_capacity_bytes", cap))
    except Exception:
        pass
    if cap >= 100 * 1024 * 1024:          # v5e / v6e: 128 MiB physical VMEM
        return 28 * 1024 * 1024, 64 * 1024 * 1024
    # v7x: 64 MiB physical VMEM per TensorCore -> stay conservative.
    return 14 * 1024 * 1024, 40 * 1024 * 1024


def _pick_block_rows(n, c, logits_itemsize, label_row_bytes, sublane, budget):
    """Row-tile size from a byte budget (no artificial small row cap).

    Resident bytes per logical row inside the kernel:
      2x double-buffered logits input + ~3 f32 full-tile temporaries
      (x_f32, exp(x-m), select/mul) + the label stream.
    """
    per_row = c * (2 * logits_itemsize + 12) + label_row_bytes
    tn = budget // max(per_row, 1)
    tn = max(sublane, min(4096, (tn // sublane) * sublane))
    n_pad = ((n + sublane - 1) // sublane) * sublane
    return min(tn, n_pad)


@functools.partial(jax.jit, static_argnames=("onehot", "block_rows"))
def base_classification_loss(logits, code_logits, labels, onehot=True,
                             block_rows=None):
    """Forward pass matching BaseClassificationLoss's interface.

    logits:      [N, C] float (f32 or bf16; kernel upcasts internally)
    code_logits: [N, nbit] float (unused by the base class)
    labels:      [N, C] one-hot if onehot=True, else [N] int class indices
    block_rows:  optional override of the row-tile size (testing / tuning)
    returns:     scalar f32 loss (mean over batch)
    """
    del code_logits  # base class defines no use for code_logits
    n, c = logits.shape

    sublane = 16 if logits.dtype == jnp.bfloat16 else 8   # bf16 packs 16 rows
    n_pad = ((n + sublane - 1) // sublane) * sublane
    budget, vmem_limit = _vmem_budget_and_limit()

    if onehot:
        label_arg = labels  # keep native dtype across the boundary
        label_row_bytes = c * (2 * labels.dtype.itemsize + 4)
    else:
        label_arg = labels.astype(jnp.int32).reshape(n, 1)
        # (tn, 1) int32 blocks are lane-padded to (tn, 128) words in VMEM;
        # charge the double-buffered padded footprint to the budget.
        label_row_bytes = 2 * 128 * 4

    if block_rows is not None:
        tn = min(max(sublane, (block_rows // sublane) * sublane), n_pad)
    else:
        tn = _pick_block_rows(n, c, logits.dtype.itemsize, label_row_bytes,
                              sublane, budget)
    nb = pl.cdiv(n, tn)

    if onehot:
        kernel = functools.partial(_ce_block_kernel_onehot,
                                   n_rows=n, block_rows=tn)
        label_spec = pl.BlockSpec((tn, c), lambda i: (i, 0))
    else:
        kernel = functools.partial(_ce_block_kernel_int,
                                   n_rows=n, block_rows=tn)
        label_spec = pl.BlockSpec((tn, 1), lambda i: (i, 0))

    bytes_in = (logits.size * logits.dtype.itemsize
                + label_arg.size * label_arg.dtype.itemsize)
    cost = pl.CostEstimate(
        flops=6 * n * c,                 # max, sub, sum, select/mul, sums
        transcendentals=n * c + n,       # exp per element + log per row
        bytes_accessed=bytes_in + 4,     # single f32 scalar output
    )

    # Accumulated (1,1) output block is resident across the whole grid, so the
    # grid axis must be "arbitrary" (kernel is HBM-bound and streams anyway).
    total = pl.pallas_call(
        kernel,
        out_shape=jax.ShapeDtypeStruct((1, 1), jnp.float32),
        grid=(nb,),
        in_specs=[
            pl.BlockSpec((tn, c), lambda i: (i, 0)),   # logits row tile
            label_spec,                                # labels (one-hot or ids)
        ],
        out_specs=pl.BlockSpec((1, 1), lambda i: (0, 0)),
        compiler_params=pltpu.CompilerParams(
            dimension_semantics=("arbitrary",),
            vmem_limit_bytes=vmem_limit),
        cost_estimate=cost,
    )(logits, label_arg)

    # Padded rows were masked in-kernel; divide by the true batch size.
    return total[0, 0] / n


if __name__ == "__main__":
    key = jax.random.PRNGKey(0)
    k1, k2, k3 = jax.random.split(key, 3)

    N, C, NBIT = 8, 32, 16
    logits = jax.random.normal(k1, (N, C), dtype=jnp.float32)
    code_logits = jax.random.normal(k2, (N, NBIT), dtype=jnp.float32)
    label_idx = jax.random.randint(k3, (N,), 0, C)
    labels_onehot = jax.nn.one_hot(label_idx, C, dtype=jnp.float32)

    ref = -jnp.mean(
        jnp.sum(labels_onehot * jax.nn.log_softmax(logits, axis=-1), axis=-1))

    # onehot=True path (labels already one-hot).
    loss = jax.block_until_ready(
        base_classification_loss(logits, code_logits, labels_onehot,
                                 onehot=True))
    assert jnp.allclose(loss, ref, atol=1e-5, rtol=1e-5), (loss, ref)

    # onehot=False path (integer labels, no one-hot materialized in HBM).
    loss2 = jax.block_until_ready(
        base_classification_loss(logits, code_logits, label_idx, onehot=False))
    assert jnp.allclose(loss2, ref, atol=1e-5, rtol=1e-5), (loss2, ref)

    # bf16 logits cross the boundary in bf16; kernel upcasts to f32.
    logits_bf16 = logits.astype(jnp.bfloat16)
    ref_bf16 = -jnp.mean(jnp.sum(
        labels_onehot * jax.nn.log_softmax(
            logits_bf16.astype(jnp.float32), axis=-1), axis=-1))
    loss3 = jax.block_until_ready(
        base_classification_loss(logits_bf16, code_logits, label_idx,
                                 onehot=False))
    assert jnp.allclose(loss3, ref_bf16, atol=1e-5, rtol=1e-5), (loss3, ref_bf16)

    # Ragged batch + forced small tile: exercises multi-block accumulation into
    # the (1,1) output and the pre-reduction padded-row mask.
    N2 = 20
    k4, k5 = jax.random.split(k3)
    logits2 = jax.random.normal(k4, (N2, C), dtype=jnp.float32)
    labels2 = jax.random.randint(k5, (N2,), 0, C)
    code2 = jnp.zeros((N2, NBIT), jnp.float32)
    ref2 = -jnp.mean(
        jax.nn.log_softmax(logits2, axis=-1)[jnp.arange(N2), labels2])
    loss4 = jax.block_until_ready(
        base_classification_loss(logits2, code2, labels2, onehot=False,
                                 block_rows=8))
    assert jnp.allclose(loss4, ref2, atol=1e-5, rtol=1e-5), (loss4, ref2)

    # Same ragged batch, one-hot path, forced multi-block grid.
    labels2_oh = jax.nn.one_hot(labels2, C, dtype=jnp.float32)
    loss5 = jax.block_until_ready(
        base_classification_loss(logits2, code2, labels2_oh, onehot=True,
                                 block_rows=8))
    assert jnp.allclose(loss5, ref2, atol=1e-5, rtol=1e-5), (loss5, ref2)

    print("KERNEL_OK")
</pallas_src>

<mosaic_0001>
module attributes {stable_mosaic.version = 11 : i64} {
  func.func @_ce_block_kernel_onehot(%arg0: i32, %arg1: memref<8x32xf32, #tpu.memory_space<vmem>>, %arg2: memref<8x32xf32, #tpu.memory_space<vmem>>, %arg3: memref<1x1xf32, #tpu.memory_space<vmem>>) attributes {dimension_semantics = [#tpu.dimension_semantics<arbitrary>], iteration_bounds = array<i64: 1>, scalar_prefetch = 0 : i64, scratch_operands = 0 : i64, tpu.core_type = #tpu.core_type<tc>, window_params = [{transform_indices = @transform_0, window_bounds = array<i64: 8, 32>}, {transform_indices = @transform_1, window_bounds = array<i64: 8, 32>}, {pipeline_mode = #tpu.pipeline_mode<synchronous>, transform_indices = @transform_2, window_bounds = array<i64: 1, 1>}]} {
    %c0_i32 = arith.constant 0 : i32
    %0 = arith.cmpi eq, %arg0, %c0_i32 : i32
    %1 = arith.extui %0 : i1 to i32
    %c0_i32_0 = arith.constant 0 : i32
    %2 = arith.cmpi ne, %1, %c0_i32_0 : i32
    scf.if %2 {
      %cst_13 = arith.constant 0.000000e+00 : f32
      %31 = vector.broadcast %cst_13 : f32 to vector<1x1xf32>
      %c0_14 = arith.constant 0 : index
      %c0_15 = arith.constant 0 : index
      %32 = vector.load %arg3[%c0_14, %c0_15] : memref<1x1xf32, #tpu.memory_space<vmem>>, vector<1x1xf32>
      tpu.vector_store %arg3[%c0_14, %c0_15], %31 {strides = array<i32>} : memref<1x1xf32, #tpu.memory_space<vmem>>, vector<1x1xf32>,
    } else {
    }
    %c0 = arith.constant 0 : index
    %c0_1 = arith.constant 0 : index
    %3 = vector.load %arg1[%c0, %c0_1] : memref<8x32xf32, #tpu.memory_space<vmem>>, vector<8x32xf32>
    %c0_2 = arith.constant 0 : index
    %c0_3 = arith.constant 0 : index
    %4 = vector.load %arg2[%c0_2, %c0_3] : memref<8x32xf32, #tpu.memory_space<vmem>>, vector<8x32xf32>
    %cst = arith.constant dense<0xFF800000> : vector<8xf32>
    %5 = vector.multi_reduction <maximumf>, %3, %cst [1] : vector<8x32xf32> to vector<8xf32>
    %6 = vector.shape_cast %5 : vector<8xf32> to vector<8x1xf32>
    %7 = vector.broadcast %6 : vector<8x1xf32> to vector<8x32xf32>
    %8 = arith.subf %3, %7 : vector<8x32xf32>
    %9 = math.exp %8 : vector<8x32xf32>
    %cst_4 = arith.constant dense<0.000000e+00> : vector<8xf32>
    %10 = vector.multi_reduction <add>, %9, %cst_4 [1] : vector<8x32xf32> to vector<8xf32>
    %11 = vector.shape_cast %10 : vector<8xf32> to vector<8x1xf32>
    %12 = math.log %11 : vector<8x1xf32>
    %13 = arith.mulf %4, %3 : vector<8x32xf32>
    %cst_5 = arith.constant dense<0.000000e+00> : vector<8xf32>
    %14 = vector.multi_reduction <add>, %13, %cst_5 [1] : vector<8x32xf32> to vector<8xf32>
    %15 = vector.shape_cast %14 : vector<8xf32> to vector<8x1xf32>
    %16 = arith.addf %6, %12 : vector<8x1xf32>
    %17 = arith.subf %16, %15 : vector<8x1xf32>
    %c8_i32 = arith.constant 8 : i32
    %18 = arith.muli %arg0, %c8_i32 : i32
    %19 = tpu.iota {dimensions = array<i32: 0>} : vector<8x1xi32>
    %20 = vector.broadcast %18 : i32 to vector<8x1xi32>
    %21 = arith.addi %20, %19 : vector<8x1xi32>
    %c8_i32_6 = arith.constant 8 : i32
    %22 = vector.broadcast %c8_i32_6 : i32 to vector<8x1xi32>
    %23 = arith.cmpi slt, %21, %22 : vector<8x1xi32>
    %cst_7 = arith.constant 0.000000e+00 : f32
    %24 = vector.broadcast %cst_7 : f32 to vector<8x1xf32>
    %25 = arith.select %23, %17, %24 : vector<8x1xi1>, vector<8x1xf32>
    %c0_8 = arith.constant 0 : index
    %c0_9 = arith.constant 0 : index
    %26 = vector.load %arg3[%c0_8, %c0_9] : memref<1x1xf32, #tpu.memory_space<vmem>>, vector<1x1xf32>
    %cst_10 = arith.constant dense<0.000000e+00> : vector<1xf32>
    %27 = vector.multi_reduction <add>, %25, %cst_10 [0] : vector<8x1xf32> to vector<1xf32>
    %28 = vector.shape_cast %27 : vector<1xf32> to vector<1x1xf32>
    %29 = arith.addf %26, %28 : vector<1x1xf32>
    %c0_11 = arith.constant 0 : index
    %c0_12 = arith.constant 0 : index
    %30 = vector.load %arg3[%c0_11, %c0_12] : memref<1x1xf32, #tpu.memory_space<vmem>>, vector<1x1xf32>
    tpu.vector_store %arg3[%c0_11, %c0_12], %29 {strides = array<i32>} : memref<1x1xf32, #tpu.memory_space<vmem>>, vector<1x1xf32>,
    return
  }
  func.func @transform_0(%arg0: i32) -> (i32, i32) {
    %c0_i32 = arith.constant 0 : i32
    %c0_i32_0 = arith.constant 0 : i32
    return %arg0, %c0_i32 : i32, i32
  }
  func.func @transform_1(%arg0: i32) -> (i32, i32) {
    %c0_i32 = arith.constant 0 : i32
    %c0_i32_0 = arith.constant 0 : i32
    return %arg0, %c0_i32 : i32, i32
  }
  func.func @transform_2(%arg0: i32) -> (i32, i32) {
    %c0_i32 = arith.constant 0 : i32
    %c0_i32_0 = arith.constant 0 : i32
    %c0_i32_1 = arith.constant 0 : i32
    return %c0_i32, %c0_i32_0 : i32, i32
  }
}

</mosaic_0001>

<bundles_post_ra>
// kernel: base_classification_loss.1
= control target key start
LH: loop header
LB: loop body
LE: loop exit
PB: predicated region body
PF: predicated region fallthrough
CT: control target
= control target key end

     0   :  { %7 = vsyncpa [#allocation3], 0  ;;  %s199_s0 = inlined_call_operand.hbm [shape: f32[8,32], index: 0, kind: input, shape index: {}]   ;;  %s200_s1 = inlined_call_operand.hbm [shape: f32[8,32], index: 1, kind: input, shape index: {}]   ;;  %s201_s2 = inlined_call_operand.hbm [shape: f32[1,1], index: 2, kind: output, shape index: {}]  }
   0x1   :  { %8 = vsyncpa [#allocation6], 0 }
   0x2   :  { %9 = vsyncpa [#allocation4], 0  ;;  %s169_s9 = smov [#allocation2]   ;;  %s170_s11 = smov [#allocation5]  }
   0x3   :  { %s16_s10 = sshll.u32 %s169_s9, 4  ;;  %s26_s12 = sshll.u32 %s170_s11, 4  ;;  %s17_s10 = int_to_ptr.vmem [resolvable:$true] %s16_s10  ;;  %s27_s12 = int_to_ptr.vmem [resolvable:$true] %s26_s12 }
   0x4   :  { %s111_s13 = scalar_lea.vmem %s17_s10, 128  ;;  %p116_p1 = scmp.lt.s32.totalorder %s17_s10, %s17_s10 }
   0x5   :  { %p112_p0 = scmp.ne.s32.totalorder %s17_s10, %s111_s13  ;;  %p117_p2 = scmp.lt.s32.totalorder %s111_s13, %s111_s13 }
   0x7   :  { %p118_p3 = por %p117_p2, %p116_p1 }
   0x9   :  { %p119_p4 = pnand %p118_p3, %p112_p0 }
   0xb   :  { %122 = shalt.err (!%p119_p4)
}
   0xc   :  { %19 = dma.hbm_to_vmem [thread:$0]  %s199_s0, 128, %s17_s10, [#allocation3]  }
   0xd   :  { %s131_s16 = scalar_lea.vmem %s27_s12, 128  ;;  %p136_p6 = scmp.lt.s32.totalorder %s27_s12, %s27_s12 }
   0xe   :  { %p132_p5 = scmp.ne.s32.totalorder %s27_s12, %s131_s16  ;;  %p137_p7 = scmp.lt.s32.totalorder %s131_s16, %s131_s16 }
  0x10   :  { %p138_p8 = por %p137_p7, %p136_p6 }
  0x12   :  { %p139_p9 = pnand %p138_p8, %p132_p5 }
  0x14   :  { %142 = shalt.err (!%p139_p9)
}
  0x15   :  { %29 = dma.hbm_to_vmem [thread:$0]  %s200_s1, 128, %s27_s12, [#allocation6]  }
  0x16   :  { %163 = dma.done.wait [#allocation3], 128  }
  0x17   :  { %164 = vsyncadd [#allocation3], 4294967168 }
  0x18   :  { %165 = dma.done.wait [#allocation6], 128  }
  0x19   :  { %166 = vsyncadd [#allocation6], 4294967168  ;;  %vm44_vm0 = vcmask 261120   ;;  %v42_v0 = vld [vmem:[#allocation2] sm:$0xff]  ;;  %v43_v2 = vld [vmem:[#allocation5] sm:$0xff]  ;;  %vm40_vm1 = vcmask 0  }
  0x1a   :  { %v45_v1 = vsel %vm44_vm0, %v42_v0, -inf  ;;  %v56_v3 = vmul.f32 %v43_v2, %v42_v0  ;;  %v171_v10 = vmov 0.0   ;;  %s172_s0 = smov [#allocation7]  }
  0x1b   :  { %46 = vmax.xlane.f32.xlu0 %v45_v1  ;;  %41 = vst.msk [vmem:[#allocation7] sm:$0x1] %vm40_vm1, %v171_v10  ;;  %s85_s1 = sshll.u32 %s172_s0, 4  ;;  %s86_s1 = int_to_ptr.vmem [resolvable:$true] %s85_s1 }
  0x1c   :  { %v57_v4 = vsel %vm44_vm0, %v56_v3, 0.0  ;;  %s143_s19 = scalar_lea.vmem %s86_s1, 16  ;;  %s147_s20 = scalar_lea.vmem %s86_s1, 32 }
  0x1d   :  { %58 = vadd.xlane.f32.xlu1 %v57_v4  ;;  %p144_p10 = scmp.ne.s32.totalorder %s86_s1, %s143_s19  ;;  %p148_p11 = scmp.lt.s32.totalorder %s86_s1, %s86_s1 }
  0x1e   :  { %p149_p12 = scmp.lt.s32.totalorder %s147_s20, %s143_s19 }
  0x20   :  { %p150_p13 = por %p149_p12, %p148_p11 }
  0x22   :  { %v69_v22 = vld [vmem:[#allocation7] sm:$0x1]  ;;  %p151_p0 = pnand %p150_p13, %p144_p10 }
  0xa4   :  { %v47_v5 = vpop.xlane.xlu0 %46 }
  0xa5   :  { %v48_v6 = vsub.f32 %v42_v0, %v47_v5 }
  0xa6   :  { %v59_v14 = vpop.xlane.xlu1 %58 }
  0xa7   :  { %v49_v7 = vmul.f32 1.442695, %v48_v6 }
  0xa9   :  { %99 = vpow2.f32 %v49_v7 }
  0xb6   :  { %v100_v8 = vpop.eup %99 }
  0xb7   :  { %v51_v9 = vsel %vm44_vm0, %v100_v8, 0.0 }
  0xb8   :  { %52 = vadd.xlane.f32.xlu0 %v51_v9 }
 0x141   :  { %v53_v11 = vpop.xlane.xlu0 %52 }
 0x142   :  { %101 = vlog2.f32 %v53_v11 }
 0x14f   :  { %v102_v12 = vpop.eup %101 }
 0x150   :  { %v55_v13 = vmul.f32 0.6931472, %v102_v12 }
 0x152   :  { %v60_v15 = vadd.f32 %v55_v13, %v47_v5 }
 0x154   :  { %v61_v16 = vsub.f32 %v60_v15, %v59_v14 }
 0x156   :  { %v70_v17 = vrot.slane %v61_v16, 4 }
 0x158   :  { %v71_v18 = vadd.f32 %v70_v17, %v61_v16 }
 0x15a   :  { %v72_v19 = vrot.slane %v71_v18, 2 }
 0x15c   :  { %v73_v20 = vadd.f32 %v72_v19, %v71_v18 }
 0x15e   :  { %v74_v21 = vrot.slane %v73_v20, 1 }
 0x160   :  { %v75_v23 = vadd.f32 %v74_v21, %v73_v20 }
 0x162   :  { %v76_v24 = vadd.f32 %v75_v23, %v69_v22 }
 0x164   :  { %78 = vst.msk [vmem:[#allocation7] sm:$0x1] %vm40_vm1, %v76_v24 }
 0x165   :  { %154 = shalt.err (!%p151_p0)
}
 0x166   :  { %88 = dma.vmem_to_hbm [thread:$0]  %s86_s1, 16, %s201_s2, [#allocation4]  }
 0x167   :  { %167 = dma.done.wait [#allocation4], 16  }
 0x168   :  { %168 = vsyncadd [#allocation4], 4294967280 }
 0x169   :  { %92 = vsyncpa [#allocation3], 1 }
 0x16a   :  { %93 = vsyncpa [#allocation6], 1 }
 0x16b   :  { %94 = vsyncpa [#allocation4], 1 }

</bundles_post_ra>
